<compile_context>
chip_gen: v5e
topology: v5e:2x2
jax: 0.10.0
libtpu: 0.0.40
codegen_flags: <defaults>
</compile_context>

<pallas_src>
import jax
import jax.numpy as jnp
from jax.experimental import pallas as pl
from jax.experimental.pallas import tpu as pltpu

NEG_SLOPE = 0.01                 # nn.LeakyReLU default negative_slope
LANE = 128
MIN_PALLAS_BYTES = 512 * 1024    # below this, plain jnp.where (fusible, no call overhead)
MIN_GRID_STEPS = 4               # keep the DMA pipeline busy + enable megacore sharding


def _leaky_relu_kernel(x_ref, o_ref):
    x = x_ref[...]
    # x >= 0 select matches PyTorch LeakyReLU (x == 0 takes the identity branch,
    # NaNs propagate through the scaled branch).
    o_ref[...] = jnp.where(x >= 0, x, NEG_SLOPE * x).astype(o_ref.dtype)


def _tiling_params():
    """Per-TPU-generation (block_bytes_per_buffer, vmem_limit_bytes_or_None)."""
    try:
        kind = jax.devices()[0].device_kind.lower()
    except Exception:
        kind = ""
    if "v7" in kind:
        # 64 MiB physical VMEM / 32 MiB scoped default, ~3.2 TB/s HBM:
        # bigger tiles to amortize the ~0.35 us/step overhead, raise scoped limit.
        return 6 * 1024 * 1024, 48 << 20
    if "v6" in kind:
        # 32 MiB scoped default: 4 double-buffers x 4 MiB = 16 MiB fits with no flags.
        return 4 * 1024 * 1024, None
    # v5e (16 MiB scoped default) and anything older / unknown: stay conservative.
    return 2 * 1024 * 1024, None


def _leaky_relu_reference(x):
    return jnp.where(x >= 0, x, NEG_SLOPE * x)


def leaky_relu(x):
    """Elementwise LeakyReLU: Pallas kernel for large 128-aligned tensors,
    fused jnp.where otherwise."""
    n = x.size
    dtype_bytes = jnp.dtype(x.dtype).itemsize
    # Small tensors / non-lane-aligned numel: let XLA handle it. It already runs at
    # one read + one write (and can fuse into the producer); avoids both pallas_call
    # fixed overhead and any pad/slice HBM round trips.
    if n == 0 or n % LANE != 0 or n * dtype_bytes < MIN_PALLAS_BYTES:
        return _leaky_relu_reference(x)

    rows = n // LANE
    x2d = jnp.reshape(x, (rows, LANE))  # contiguous reshape: free, no HBM traffic

    block_bytes, vmem_limit = _tiling_params()
    max_block_rows = max(32, (block_bytes // (LANE * dtype_bytes)) // 32 * 32)
    # Aim for >= MIN_GRID_STEPS grid steps so the software pipeline overlaps
    # DMA-in / compute / DMA-out and the "parallel" axis can shard across TCs.
    desired_rows = ((pl.cdiv(rows, MIN_GRID_STEPS) + 31) // 32) * 32
    block_rows = max(32, min(max_block_rows, desired_rows))
    grid = (pl.cdiv(rows, block_rows),)  # partial last block is masked by Pallas

    out2d = pl.pallas_call(
        _leaky_relu_kernel,
        out_shape=jax.ShapeDtypeStruct((rows, LANE), x.dtype),
        grid_spec=pltpu.PrefetchScalarGridSpec(
            num_scalar_prefetch=0,
            grid=grid,
            in_specs=[pl.BlockSpec((block_rows, LANE), lambda i: (i, 0))],
            out_specs=pl.BlockSpec((block_rows, LANE), lambda i: (i, 0)),
        ),
        compiler_params=pltpu.CompilerParams(
            dimension_semantics=("parallel",),   # shardable across v7x's 2 TensorCores
            vmem_limit_bytes=vmem_limit,
        ),
        # TODO(synk): with donated caller buffers, input_output_aliases={0: 0} would
        # reuse the input HBM buffer (mirrors nn.LeakyReLU(inplace=True)); left off to
        # avoid XLA inserting defensive copies when the input is not donated.
    )(x2d)
    return out2d.reshape(x.shape)


def leaky_relu_module_forward(inputs):
    """Mirrors LeakyRelu.forward: (x, m) -> (leaky_relu(x), m); m passes through."""
    x, m = inputs
    return (leaky_relu(x), m)


if __name__ == "__main__":
    key = jax.random.PRNGKey(0)
    kx, km, k2, k3, k4 = jax.random.split(key, 5)

    # 1) Module-spec shapes (NCHW conv activation + 1-channel sparse-invariant mask).
    #    8 KiB -> intentionally takes the small-size fused fallback path.
    x = jax.random.normal(kx, (2, 4, 16, 16), dtype=jnp.float32)
    m = (jax.random.uniform(km, (2, 1, 16, 16)) > 0.5).astype(jnp.float32)
    out_x, out_m = leaky_relu_module_forward((x, m))
    jax.block_until_ready(out_x)
    jax.block_until_ready(out_m)
    assert out_x.shape == x.shape and out_x.dtype == x.dtype
    assert jnp.allclose(out_x, _leaky_relu_reference(x), atol=1e-6), "mismatch (module shape)"
    assert jnp.array_equal(out_m, m), "mask must pass through unchanged"

    # 2) Larger activation -> Pallas kernel path (rows=4096, ~4 parallel grid steps).
    x_big = jax.random.normal(k2, (2, 32, 64, 64), dtype=jnp.float32)
    out_big = leaky_relu(x_big)
    jax.block_until_ready(out_big)
    assert jnp.allclose(out_big, _leaky_relu_reference(x_big), atol=1e-6), "mismatch (pallas path)"

    # 3) Row count not divisible by the block -> exercises the masked partial last block.
    x_part = jax.random.normal(k3, (3, 32, 40, 40), dtype=jnp.float32)  # rows=1200
    out_part = leaky_relu(x_part)
    jax.block_until_ready(out_part)
    assert jnp.allclose(out_part, _leaky_relu_reference(x_part), atol=1e-6), "mismatch (partial block)"

    # 4) bf16 activation through the Pallas path (dtype-dependent block sizing).
    x_bf16 = jax.random.normal(k4, (2, 32, 64, 64), dtype=jnp.bfloat16)
    out_bf16 = leaky_relu(x_bf16)
    jax.block_until_ready(out_bf16)
    assert jnp.allclose(out_bf16.astype(jnp.float32),
                        _leaky_relu_reference(x_bf16).astype(jnp.float32),
                        atol=1e-2), "mismatch (bf16)"

    # 5) Non-128-aligned numel -> pure-JAX fallback (no pad/slice HBM round trips).
    x_odd = jax.random.normal(kx, (3, 5, 7, 9), dtype=jnp.float32)
    out_odd = leaky_relu(x_odd)
    jax.block_until_ready(out_odd)
    assert jnp.allclose(out_odd, _leaky_relu_reference(x_odd), atol=1e-6), "mismatch (odd shape)"

    print("KERNEL_OK")
</pallas_src>

<mosaic_0001>
module attributes {stable_mosaic.version = 11 : i64} {
  func.func @_leaky_relu_kernel(%arg0: i32, %arg1: memref<512x128xf32, #tpu.memory_space<vmem>>, %arg2: memref<512x128xf32, #tpu.memory_space<vmem>>) attributes {dimension_semantics = [#tpu.dimension_semantics<parallel>], iteration_bounds = array<i64: 4>, scalar_prefetch = 0 : i64, scratch_operands = 0 : i64, tpu.core_type = #tpu.core_type<tc>, window_params = [{transform_indices = @transform_0, window_bounds = array<i64: 512, 128>}, {transform_indices = @transform_1, window_bounds = array<i64: 512, 128>}]} {
    %c0 = arith.constant 0 : index
    %c0_0 = arith.constant 0 : index
    %0 = vector.load %arg1[%c0, %c0_0] : memref<512x128xf32, #tpu.memory_space<vmem>>, vector<512x128xf32>
    %cst = arith.constant 0.000000e+00 : f32
    %1 = vector.broadcast %cst : f32 to vector<512x128xf32>
    %2 = arith.cmpf oge, %0, %1 : vector<512x128xf32>
    %cst_1 = arith.constant 0.00999999977 : f32
    %3 = vector.broadcast %cst_1 : f32 to vector<512x128xf32>
    %4 = arith.mulf %3, %0 : vector<512x128xf32>
    %5 = arith.select %2, %0, %4 : vector<512x128xi1>, vector<512x128xf32>
    %c0_2 = arith.constant 0 : index
    %c0_3 = arith.constant 0 : index
    %6 = vector.load %arg2[%c0_2, %c0_3] : memref<512x128xf32, #tpu.memory_space<vmem>>, vector<512x128xf32>
    tpu.vector_store %arg2[%c0_2, %c0_3], %5 {strides = array<i32>} : memref<512x128xf32, #tpu.memory_space<vmem>>, vector<512x128xf32>,
    return
  }
  func.func @transform_0(%arg0: i32) -> (i32, i32) {
    %c0_i32 = arith.constant 0 : i32
    %c0_i32_0 = arith.constant 0 : i32
    return %arg0, %c0_i32 : i32, i32
  }
  func.func @transform_1(%arg0: i32) -> (i32, i32) {
    %c0_i32 = arith.constant 0 : i32
    %c0_i32_0 = arith.constant 0 : i32
    return %arg0, %c0_i32 : i32, i32
  }
}

</mosaic_0001>

<bundles_post_ra>
// kernel: tpu_custom_call.1
= control target key start
LH: loop header
LB: loop body
LE: loop exit
PB: predicated region body
PF: predicated region fallthrough
CT: control target
= control target key end

     0   :  { %6 = vsyncpa [#allocation3], 0  ;;  %s984_s0 = inlined_call_operand.hbm [shape: f32[2048,128], index: 0, kind: input, shape index: {}]   ;;  %s985_s1 = inlined_call_operand.hbm [shape: f32[2048,128], index: 1, kind: output, shape index: {}]  }
   0x1   :  { %8 = vsyncpa [#allocation3 + $0x1], 0 }
   0x2   :  { %9 = vsyncpa [#allocation4], 0 }
   0x3   :  { %11 = vsyncpa [#allocation4 + $0x1], 0  ;;  %s726_s6 = smov 0   ;;  %s728_s7 = smov 0  }
   0x4   :  { %s730_s8 = smov 0   ;;  %s732_s9 = smov 0  }
   0x5 LB: > { %s747_s10 = sadd.s32 4294967295, %s710_s9   ;;  %s548_s11 = sadd.s32 4294967294, %s710_s9   ;;  %s710_s9 = sphi %s732_s9, %s994_s9   ;;  %s706_s8 = sphi %s730_s8, %s993_s8   ;;  %s702_s7 = sphi %s728_s7, %s992_s7   ;;  %s698_s6 = sphi %s726_s6, %s991_s6  }
   0x6   : > { %s751_s12 = sadd.s32 1, %s710_s9   ;;  %s24_s13 = sadd.s32 1, %s706_s8 }
   0x7   : > { %s21_s14 = ssub.s32 %s710_s9, %s751_s12  ;;  %p31_p0 = scmp.ne.s32.totalorder %s706_s8, %s702_s7 }
   0x8   : > { %p22_p1 = scmp.eq.s32.totalorder %s21_s14, 0  ;;  %p32_p2 = scmp.eq.s32.totalorder %s710_s9, 0 }
   0x9   : > { %p37_p3 = scmp.ne.s32.totalorder %s702_s7, %s698_s6  ;;  %p38_p4 = scmp.eq.s32.totalorder %s747_s10, 0 }
   0xa   : > { %s763_s15 = scalar_select %p22_p1, %s706_s8, %s24_s13  }
   0xb   : > { %p765_p5 = por %p32_p2, %p31_p0  ;;  %p769_p6 = por %p38_p4, %p37_p3 }
   0xc   : > { %p61_p7 = scmp.eq.s32.totalorder %s747_s10, 3  ;;  %p67_p8 = scmp.eq.s32.totalorder %s548_s11, 3 }
   0xd   : > { %p576_p9 = scmp.lt.s32.totalorder %s710_s9, 4  ;;  %s87_s20 = sand.u32 1, %s706_s8  }
   0xe   : > { %p775_p10 = por %p61_p7, %p31_p0  ;;  %p779_p11 = por %p67_p8, %p37_p3 }
   0xf   : > { %s562_s21 = sshll.u32 %s710_s9, 9  ;;  %s551_s22 = sshll.u32 %s87_s20, 9 }
  0x10   : > { %s96_s25 = scalar_lea.hbm %s984_s0, %s562_s21  ;;  %s91_s27 = scalar_lea.vmem [#allocation2], %s551_s22 }
  0x11   : > { %s97_s26 = sshll.u32 %s96_s25, 4  ;;  %s99_s28 = sshll.u32 %s91_s27, 4  ;;  %s98_s26 = int_to_ptr.hbm [resolvable:$true] %s97_s26  ;;  %s100_s28 = int_to_ptr.vmem [resolvable:$true] %s99_s28 }
  0x12   : > { %p790_p12 = pnand %p576_p9, %p765_p5  ;;  %p554_p13 = scmp.ge.s32.totalorder %s710_s9, 1 }
  0x13   : > { %p107_p0 = scmp.lt.s32.totalorder %s710_s9, 5  ;;  %s88_s30 = scalar_lea.sflag [#allocation3], %s87_s20 }
  0x14   : > { %s614_s2 = sshra.s32 %s98_s26, 4  ;;  %p618_p2 = pneg %p790_p12  ;;  %s615_s2 = int_to_ptr.hbm [resolvable:$true] %s614_s2 }
  0x15   : > { %s616_s3 = scalar_lea.hbm %s615_s2, 512  ;;  %s621_s11 = scalar_lea.hbm %s984_s0, 2048 }
  0x16   : > { %p617_p1 = scmp.ne.s32.totalorder %s615_s2, %s616_s3  ;;  %p622_p5 = scmp.lt.s32.totalorder %s615_s2, %s984_s0 }
  0x17   : > { %p623_p7 = scmp.lt.s32.totalorder %s621_s11, %s616_s3 }
  0x18   : > { %p619_p3 = pnand %p618_p2, %p617_p1 }
  0x19   : > { %p624_p8 = por %p623_p7, %p622_p5 }
  0x1a   : > { %p620_p4 = pneg %p619_p3 }
  0x1c   : > { %p625_p9 = pnand %p624_p8, %p620_p4 }
  0x1e   : > { %628 = shalt.err (!%p625_p9)
}
  0x1f   : > { %s712_s16 = smov 128   ;;  %s713_s20 = smov 8  }
  0x20   : > { %571 = dma.hbm_to_vmem [thread:$0]  (!%p790_p12), %s98_s26, 8192, %s100_s28, %s88_s30, %s712_s16, %s712_s16, %s713_s20  }
  0x21   : > { %p108_p1 = pnand %p554_p13, %p107_p0 }
  0x22   : > { %s811_s21 = sand.u32 (!%p108_p1), 1, %s702_s7  }
  0x23   : > { %111 = sbr.rel (%p108_p1) target bundleno = 112 (0x70), region = 24  ;;  %s555_s22 = sshll.u32 (!%p108_p1), %s811_s21, 9 }
  0x24   : > { %s114_s23 = scalar_lea.sflag (!%p108_p1), [#allocation3], %s811_s21  ;;  %s815_s24 = scalar_lea.vmem (!%p108_p1), [#allocation2], %s555_s22 }
  0x28   : > { %689 = dma.done.wait (%p769_p6), %s114_s23, 8192  }
  0x29   : > { %691 = vsyncadd (%p769_p6), %s114_s23, 4294959104  ;;  %v139_v0 = vld [vmem:[%s815_s24] sm:$0xff]  ;;  %v140_v1 = vld [vmem:[%s815_s24 + $0x8] sm:$0xff]  ;;  %s830_s17 = scalar_lea.vmem [#allocation5], %s555_s22  ;;  %s563_s25 = sshll.u32 %s747_s10, 9 }
  0x2a   : > { %v141_v2 = vld [vmem:[%s815_s24 + $0x10] sm:$0xff]  ;;  %vm203_vm0 = vcmp.ge.f32.partialorder %v139_v0, 0.0  ;;  %v267_v3 = vmul.f32 0.01, %v139_v0  ;;  %vm204_vm1 = vcmp.ge.f32.partialorder %v140_v1, 0.0  ;;  %v142_v6 = vld [vmem:[%s815_s24 + $0x18] sm:$0xff]  ;;  %s471_s27 = scalar_lea.hbm %s985_s1, %s563_s25 }
  0x2b   : > { %v268_v4 = vmul.f32 0.01, %v140_v1  ;;  %vm205_vm2 = vcmp.ge.f32.partialorder %v141_v2, 0.0  ;;  %v269_v5 = vmul.f32 0.01, %v141_v2  ;;  %v143_v7 = vld [vmem:[%s815_s24 + $0x20] sm:$0xff] }
  0x2c   : > { %v144_v8 = vld [vmem:[%s815_s24 + $0x28] sm:$0xff]  ;;  %v331_v9 = vsel %vm203_vm0, %v139_v0, %v267_v3  ;;  %vm206_vm3 = vcmp.ge.f32.partialorder %v142_v6, 0.0  ;;  %v270_v11 = vmul.f32 0.01, %v142_v6  ;;  %v145_v12 = vld [vmem:[%s815_s24 + $0x30] sm:$0xff]  ;;  %v146_v13 = vld [vmem:[%s815_s24 + $0x38] sm:$0xff] }
  0x2d   : > { %v332_v10 = vsel %vm204_vm1, %v140_v1, %v268_v4  ;;  %v147_v14 = vld [vmem:[%s815_s24 + $0x40] sm:$0xff]  ;;  %395 = vst [vmem:[%s830_s17] sm:$0xff] %v331_v9  ;;  %v333_v15 = vsel %vm205_vm2, %v141_v2, %v269_v5  ;;  %vm207_vm4 = vcmp.ge.f32.partialorder %v143_v7, 0.0  ;;  %v271_v16 = vmul.f32 0.01, %v143_v7  ;;  %v148_v17 = vld [vmem:[%s815_s24 + $0x48] sm:$0xff]  ;;  %v149_v18 = vld [vmem:[%s815_s24 + $0x50] sm:$0xff] }
  0x2e   : > { %vm208_vm5 = vcmp.ge.f32.partialorder %v144_v8, 0.0  ;;  %396 = vst [vmem:[%s830_s17 + $0x8] sm:$0xff] %v332_v10  ;;  %v334_v19 = vsel %vm206_vm3, %v142_v6, %v270_v11  ;;  %v272_v20 = vmul.f32 0.01, %v144_v8  ;;  %vm209_vm6 = vcmp.ge.f32.partialorder %v145_v12, 0.0  ;;  %v150_v24 = vld [vmem:[%s815_s24 + $0x58] sm:$0xff] }
  0x2f   : > { %v273_v21 = vmul.f32 0.01, %v145_v12  ;;  %397 = vst [vmem:[%s830_s17 + $0x10] sm:$0xff] %v333_v15  ;;  %v335_v22 = vsel %vm207_vm4, %v143_v7, %v271_v16  ;;  %vm210_vm7 = vcmp.ge.f32.partialorder %v146_v13, 0.0  ;;  %v274_v23 = vmul.f32 0.01, %v146_v13 }
  0x30   : > { %vm211_vm8 = vcmp.ge.f32.partialorder %v147_v14, 0.0  ;;  %398 = vst [vmem:[%s830_s17 + $0x18] sm:$0xff] %v334_v19  ;;  %v336_v25 = vsel %vm208_vm5, %v144_v8, %v272_v20  ;;  %v275_v27 = vmul.f32 0.01, %v147_v14  ;;  %vm212_vm9 = vcmp.ge.f32.partialorder %v148_v17, 0.0  ;;  %v151_v28 = vld [vmem:[%s815_s24 + $0x60] sm:$0xff] }
  0x31   : > { %v337_v26 = vsel %vm209_vm6, %v145_v12, %v273_v21  ;;  %v152_v29 = vld [vmem:[%s815_s24 + $0x68] sm:$0xff]  ;;  %399 = vst [vmem:[%s830_s17 + $0x20] sm:$0xff] %v335_v22  ;;  %v338_v30 = vsel %vm210_vm7, %v146_v13, %v274_v23  ;;  %v276_v31 = vmul.f32 0.01, %v148_v17  ;;  %vm213_vm10 = vcmp.ge.f32.partialorder %v149_v18, 0.0  ;;  %v153_v35 = vld [vmem:[%s815_s24 + $0x70] sm:$0xff] }
  0x32   : > { %v277_v32 = vmul.f32 0.01, %v149_v18  ;;  %400 = vst [vmem:[%s830_s17 + $0x28] sm:$0xff] %v336_v25  ;;  %v339_v33 = vsel %vm211_vm8, %v147_v14, %v275_v27  ;;  %vm214_vm11 = vcmp.ge.f32.partialorder %v150_v24, 0.0  ;;  %v278_v34 = vmul.f32 0.01, %v150_v24 }
  0x33   : > { %401 = vst [vmem:[%s830_s17 + $0x30] sm:$0xff] %v337_v26  ;;  %v340_v36 = vsel %vm212_vm9, %v148_v17, %v276_v31  ;;  %vm215_vm12 = vcmp.ge.f32.partialorder %v151_v28, 0.0  ;;  %v279_v37 = vmul.f32 0.01, %v151_v28  ;;  %v154_v38 = vld [vmem:[%s815_s24 + $0x78] sm:$0xff]  ;;  %v155_v39 = vld [vmem:[%s815_s24 + $0x80] sm:$0xff] }
  0x34   : > { %402 = vst [vmem:[%s830_s17 + $0x38] sm:$0xff] %v338_v30  ;;  %v341_v40 = vsel %vm213_vm10, %v149_v18, %v277_v32  ;;  %vm216_vm13 = vcmp.ge.f32.partialorder %v152_v29, 0.0  ;;  %v280_v41 = vmul.f32 0.01, %v152_v29  ;;  %v281_v42 = vmul.f32 0.01, %v153_v35 }
  0x35   : > { %403 = vst [vmem:[%s830_s17 + $0x40] sm:$0xff] %v339_v33  ;;  %v342_v43 = vsel %vm214_vm11, %v150_v24, %v278_v34  ;;  %vm217_vm14 = vcmp.ge.f32.partialorder %v153_v35, 0.0  ;;  %v282_v44 = vmul.f32 0.01, %v154_v38  ;;  %v156_v45 = vld [vmem:[%s815_s24 + $0x88] sm:$0xff]  ;;  %v343_v46 = vsel %vm215_vm12, %v151_v28, %v279_v37  ;;  %v157_v48 = vld [vmem:[%s815_s24 + $0x90] sm:$0xff] }
  0x36   : > { %404 = vst [vmem:[%s830_s17 + $0x48] sm:$0xff] %v340_v36  ;;  %vm218_vm15 = vcmp.ge.f32.partialorder %v154_v38, 0.0  ;;  %v283_v47 = vmul.f32 0.01, %v155_v39  ;;  %v158_v49 = vld [vmem:[%s815_s24 + $0x98] sm:$0xff]  ;;  %v344_v50 = vsel %vm216_vm13, %v152_v29, %v280_v41  ;;  %vm219_vm0 = vcmp.ge.f32.partialorder %v155_v39, 0.0 }
  0x37   : > { %405 = vst [vmem:[%s830_s17 + $0x50] sm:$0xff] %v341_v40  ;;  %v284_v51 = vmul.f32 0.01, %v156_v45  ;;  %v345_v52 = vsel %vm217_vm14, %v153_v35, %v281_v42  ;;  %vm220_vm1 = vcmp.ge.f32.partialorder %v156_v45, 0.0  ;;  %v285_v53 = vmul.f32 0.01, %v157_v48 }
  0x38   : > { %406 = vst [vmem:[%s830_s17 + $0x58] sm:$0xff] %v342_v43  ;;  %v159_v54 = vld [vmem:[%s815_s24 + $0xa0] sm:$0xff]  ;;  %v160_v55 = vld [vmem:[%s815_s24 + $0xa8] sm:$0xff]  ;;  %v346_v56 = vsel %vm218_vm15, %v154_v38, %v282_v44  ;;  %vm221_vm2 = vcmp.ge.f32.partialorder %v157_v48, 0.0  ;;  %v286_v57 = vmul.f32 0.01, %v158_v49  ;;  %v347_v59 = vsel %vm219_vm0, %v155_v39, %v283_v47 }
  0x39   : > { %407 = vst [vmem:[%s830_s17 + $0x60] sm:$0xff] %v343_v46  ;;  %v161_v58 = vld [vmem:[%s815_s24 + $0xb0] sm:$0xff]  ;;  %vm222_vm3 = vcmp.ge.f32.partialorder %v158_v49, 0.0  ;;  %v287_v60 = vmul.f32 0.01, %v159_v54  ;;  %v162_v61 = vld [vmem:[%s815_s24 + $0xb8] sm:$0xff]  ;;  %v348_v62 = vsel %vm220_vm1, %v156_v45, %v284_v51  ;;  %v349_v1 = vsel %vm221_vm2, %v157_v48, %v285_v53 }
  0x3a   : > { %408 = vst [vmem:[%s830_s17 + $0x68] sm:$0xff] %v344_v50  ;;  %vm223_vm4 = vcmp.ge.f32.partialorder %v159_v54, 0.0  ;;  %v288_v63 = vmul.f32 0.01, %v160_v55  ;;  %v163_v0 = vld [vmem:[%s815_s24 + $0xc0] sm:$0xff]  ;;  %vm224_vm5 = vcmp.ge.f32.partialorder %v160_v55, 0.0  ;;  %v350_v4 = vsel %vm222_vm3, %v158_v49, %v286_v57 }
  0x3b   : > { %409 = vst [vmem:[%s830_s17 + $0x70] sm:$0xff] %v345_v52  ;;  %v289_v2 = vmul.f32 0.01, %v161_v58  ;;  %v164_v3 = vld [vmem:[%s815_s24 + $0xc8] sm:$0xff]  ;;  %vm225_vm6 = vcmp.ge.f32.partialorder %v161_v58, 0.0  ;;  %v165_v6 = vld [vmem:[%s815_s24 + $0xd0] sm:$0xff]  ;;  %v351_v7 = vsel %vm223_vm4, %v159_v54, %v287_v60 }
  0x3c   : > { %410 = vst [vmem:[%s830_s17 + $0x78] sm:$0xff] %v346_v56  ;;  %v290_v5 = vmul.f32 0.01, %v162_v61  ;;  %vm226_vm7 = vcmp.ge.f32.partialorder %v162_v61, 0.0  ;;  %v291_v8 = vmul.f32 0.01, %v163_v0  ;;  %v352_v10 = vsel %vm224_vm5, %v160_v55, %v288_v63 }
  0x3d   : > { %411 = vst [vmem:[%s830_s17 + $0x80] sm:$0xff] %v347_v59  ;;  %v166_v9 = vld [vmem:[%s815_s24 + $0xd8] sm:$0xff]  ;;  %vm227_vm8 = vcmp.ge.f32.partialorder %v163_v0, 0.0  ;;  %v292_v11 = vmul.f32 0.01, %v164_v3  ;;  %v167_v12 = vld [vmem:[%s815_s24 + $0xe0] sm:$0xff]  ;;  %v353_v13 = vsel %vm225_vm6, %v161_v58, %v289_v2 }
  0x3e   : > { %412 = vst [vmem:[%s830_s17 + $0x88] sm:$0xff] %v348_v62  ;;  %vm228_vm9 = vcmp.ge.f32.partialorder %v164_v3, 0.0  ;;  %v293_v14 = vmul.f32 0.01, %v165_v6  ;;  %v168_v15 = vld [vmem:[%s815_s24 + $0xe8] sm:$0xff]  ;;  %v354_v16 = vsel %vm226_vm7, %v162_v61, %v290_v5  ;;  %vm229_vm10 = vcmp.ge.f32.partialorder %v165_v6, 0.0 }
  0x3f   : > { %413 = vst [vmem:[%s830_s17 + $0x90] sm:$0xff] %v349_v1  ;;  %v294_v17 = vmul.f32 0.01, %v166_v9  ;;  %v169_v18 = vld [vmem:[%s815_s24 + $0xf0] sm:$0xff]  ;;  %v355_v19 = vsel %vm227_vm8, %v163_v0, %v291_v8  ;;  %vm230_vm11 = vcmp.ge.f32.partialorder %v166_v9, 0.0  ;;  %v170_v21 = vld [vmem:[%s815_s24 + $0xf8] sm:$0xff]  ;;  %v356_v22 = vsel %vm228_vm9, %v164_v3, %v292_v11 }
  0x40   : > { %414 = vst [vmem:[%s830_s17 + $0x98] sm:$0xff] %v350_v4  ;;  %v295_v20 = vmul.f32 0.01, %v167_v12  ;;  %vm231_vm12 = vcmp.ge.f32.partialorder %v167_v12, 0.0  ;;  %v296_v23 = vmul.f32 0.01, %v168_v15  ;;  %v357_v25 = vsel %vm229_vm10, %v165_v6, %v293_v14 }
  0x41   : > { %415 = vst [vmem:[%s830_s17 + $0xa0] sm:$0xff] %v351_v7  ;;  %v171_v24 = vld [vmem:[%s815_s24 + $0x100] sm:$0xff]  ;;  %vm232_vm13 = vcmp.ge.f32.partialorder %v168_v15, 0.0  ;;  %v297_v26 = vmul.f32 0.01, %v169_v18  ;;  %v172_v27 = vld [vmem:[%s815_s24 + $0x108] sm:$0xff]  ;;  %v358_v28 = vsel %vm230_vm11, %v166_v9, %v294_v17 }
  0x42   : > { %416 = vst [vmem:[%s830_s17 + $0xa8] sm:$0xff] %v352_v10  ;;  %vm233_vm14 = vcmp.ge.f32.partialorder %v169_v18, 0.0  ;;  %v298_v29 = vmul.f32 0.01, %v170_v21  ;;  %v173_v30 = vld [vmem:[%s815_s24 + $0x110] sm:$0xff]  ;;  %v359_v31 = vsel %vm231_vm12, %v167_v12, %v295_v20  ;;  %vm234_vm15 = vcmp.ge.f32.partialorder %v170_v21, 0.0 }
  0x43   : > { %417 = vst [vmem:[%s830_s17 + $0xb0] sm:$0xff] %v353_v13  ;;  %v299_v32 = vmul.f32 0.01, %v171_v24  ;;  %v174_v33 = vld [vmem:[%s815_s24 + $0x118] sm:$0xff]  ;;  %v360_v34 = vsel %vm232_vm13, %v168_v15, %v296_v23  ;;  %vm235_vm0 = vcmp.ge.f32.partialorder %v171_v24, 0.0  ;;  %v175_v36 = vld [vmem:[%s815_s24 + $0x120] sm:$0xff]  ;;  %v361_v37 = vsel %vm233_vm14, %v169_v18, %v297_v26 }
  0x44   : > { %418 = vst [vmem:[%s830_s17 + $0xb8] sm:$0xff] %v354_v16  ;;  %v300_v35 = vmul.f32 0.01, %v172_v27  ;;  %vm236_vm1 = vcmp.ge.f32.partialorder %v172_v27, 0.0  ;;  %v301_v38 = vmul.f32 0.01, %v173_v30  ;;  %v362_v40 = vsel %vm234_vm15, %v170_v21, %v298_v29 }
  0x45   : > { %419 = vst [vmem:[%s830_s17 + $0xc0] sm:$0xff] %v355_v19  ;;  %v176_v39 = vld [vmem:[%s815_s24 + $0x128] sm:$0xff]  ;;  %vm237_vm2 = vcmp.ge.f32.partialorder %v173_v30, 0.0  ;;  %v302_v41 = vmul.f32 0.01, %v174_v33  ;;  %v177_v42 = vld [vmem:[%s815_s24 + $0x130] sm:$0xff]  ;;  %v363_v43 = vsel %vm235_vm0, %v171_v24, %v299_v32 }
  0x46   : > { %420 = vst [vmem:[%s830_s17 + $0xc8] sm:$0xff] %v356_v22  ;;  %vm238_vm3 = vcmp.ge.f32.partialorder %v174_v33, 0.0  ;;  %v303_v44 = vmul.f32 0.01, %v175_v36  ;;  %v178_v45 = vld [vmem:[%s815_s24 + $0x138] sm:$0xff]  ;;  %v364_v46 = vsel %vm236_vm1, %v172_v27, %v300_v35  ;;  %vm239_vm4 = vcmp.ge.f32.partialorder %v175_v36, 0.0 }
  0x47   : > { %421 = vst [vmem:[%s830_s17 + $0xd0] sm:$0xff] %v357_v25  ;;  %v304_v47 = vmul.f32 0.01, %v176_v39  ;;  %v179_v48 = vld [vmem:[%s815_s24 + $0x140] sm:$0xff]  ;;  %v365_v49 = vsel %vm237_vm2, %v173_v30, %v301_v38  ;;  %vm240_vm5 = vcmp.ge.f32.partialorder %v176_v39, 0.0  ;;  %v180_v51 = vld [vmem:[%s815_s24 + $0x148] sm:$0xff]  ;;  %v366_v52 = vsel %vm238_vm3, %v174_v33, %v302_v41 }
  0x48   : > { %422 = vst [vmem:[%s830_s17 + $0xd8] sm:$0xff] %v358_v28  ;;  %v305_v50 = vmul.f32 0.01, %v177_v42  ;;  %vm241_vm6 = vcmp.ge.f32.partialorder %v177_v42, 0.0  ;;  %v306_v53 = vmul.f32 0.01, %v178_v45  ;;  %v367_v55 = vsel %vm239_vm4, %v175_v36, %v303_v44 }
  0x49   : > { %423 = vst [vmem:[%s830_s17 + $0xe0] sm:$0xff] %v359_v31  ;;  %v181_v54 = vld [vmem:[%s815_s24 + $0x150] sm:$0xff]  ;;  %vm242_vm7 = vcmp.ge.f32.partialorder %v178_v45, 0.0  ;;  %v307_v56 = vmul.f32 0.01, %v179_v48  ;;  %v182_v57 = vld [vmem:[%s815_s24 + $0x158] sm:$0xff]  ;;  %v368_v58 = vsel %vm240_vm5, %v176_v39, %v304_v47 }
  0x4a   : > { %424 = vst [vmem:[%s830_s17 + $0xe8] sm:$0xff] %v360_v34  ;;  %vm243_vm8 = vcmp.ge.f32.partialorder %v179_v48, 0.0  ;;  %v308_v59 = vmul.f32 0.01, %v180_v51  ;;  %v183_v60 = vld [vmem:[%s815_s24 + $0x160] sm:$0xff]  ;;  %v369_v61 = vsel %vm241_vm6, %v177_v42, %v305_v50  ;;  %vm244_vm9 = vcmp.ge.f32.partialorder %v180_v51, 0.0 }
  0x4b   : > { %425 = vst [vmem:[%s830_s17 + $0xf0] sm:$0xff] %v361_v37  ;;  %v309_v62 = vmul.f32 0.01, %v181_v54  ;;  %v184_v63 = vld [vmem:[%s815_s24 + $0x168] sm:$0xff]  ;;  %v370_v0 = vsel %vm242_vm7, %v178_v45, %v306_v53  ;;  %vm245_vm10 = vcmp.ge.f32.partialorder %v181_v54, 0.0  ;;  %v185_v2 = vld [vmem:[%s815_s24 + $0x170] sm:$0xff]  ;;  %v371_v3 = vsel %vm243_vm8, %v179_v48, %v307_v56 }
  0x4c   : > { %426 = vst [vmem:[%s830_s17 + $0xf8] sm:$0xff] %v362_v40  ;;  %v310_v1 = vmul.f32 0.01, %v182_v57  ;;  %vm246_vm11 = vcmp.ge.f32.partialorder %v182_v57, 0.0  ;;  %v311_v4 = vmul.f32 0.01, %v183_v60  ;;  %v372_v6 = vsel %vm244_vm9, %v180_v51, %v308_v59 }
  0x4d   : > { %427 = vst [vmem:[%s830_s17 + $0x100] sm:$0xff] %v363_v43  ;;  %v186_v5 = vld [vmem:[%s815_s24 + $0x178] sm:$0xff]  ;;  %vm247_vm12 = vcmp.ge.f32.partialorder %v183_v60, 0.0  ;;  %v312_v7 = vmul.f32 0.01, %v184_v63  ;;  %v187_v8 = vld [vmem:[%s815_s24 + $0x180] sm:$0xff]  ;;  %v373_v9 = vsel %vm245_vm10, %v181_v54, %v309_v62 }
  0x4e   : > { %428 = vst [vmem:[%s830_s17 + $0x108] sm:$0xff] %v364_v46  ;;  %vm248_vm13 = vcmp.ge.f32.partialorder %v184_v63, 0.0  ;;  %v313_v10 = vmul.f32 0.01, %v185_v2  ;;  %v188_v11 = vld [vmem:[%s815_s24 + $0x188] sm:$0xff]  ;;  %v374_v12 = vsel %vm246_vm11, %v182_v57, %v310_v1  ;;  %vm249_vm14 = vcmp.ge.f32.partialorder %v185_v2, 0.0 }
  0x4f   : > { %429 = vst [vmem:[%s830_s17 + $0x110] sm:$0xff] %v365_v49  ;;  %v314_v13 = vmul.f32 0.01, %v186_v5  ;;  %v189_v14 = vld [vmem:[%s815_s24 + $0x190] sm:$0xff]  ;;  %v375_v15 = vsel %vm247_vm12, %v183_v60, %v311_v4  ;;  %vm250_vm15 = vcmp.ge.f32.partialorder %v186_v5, 0.0  ;;  %v190_v17 = vld [vmem:[%s815_s24 + $0x198] sm:$0xff]  ;;  %v376_v18 = vsel %vm248_vm13, %v184_v63, %v312_v7 }
  0x50   : > { %430 = vst [vmem:[%s830_s17 + $0x118] sm:$0xff] %v366_v52  ;;  %v315_v16 = vmul.f32 0.01, %v187_v8  ;;  %vm251_vm0 = vcmp.ge.f32.partialorder %v187_v8, 0.0  ;;  %v316_v19 = vmul.f32 0.01, %v188_v11  ;;  %v377_v21 = vsel %vm249_vm14, %v185_v2, %v313_v10 }
  0x51   : > { %431 = vst [vmem:[%s830_s17 + $0x120] sm:$0xff] %v367_v55  ;;  %v191_v20 = vld [vmem:[%s815_s24 + $0x1a0] sm:$0xff]  ;;  %vm252_vm1 = vcmp.ge.f32.partialorder %v188_v11, 0.0  ;;  %v317_v22 = vmul.f32 0.01, %v189_v14  ;;  %v192_v23 = vld [vmem:[%s815_s24 + $0x1a8] sm:$0xff]  ;;  %v378_v24 = vsel %vm250_vm15, %v186_v5, %v314_v13 }
  0x52   : > { %432 = vst [vmem:[%s830_s17 + $0x128] sm:$0xff] %v368_v58  ;;  %vm253_vm2 = vcmp.ge.f32.partialorder %v189_v14, 0.0  ;;  %v318_v25 = vmul.f32 0.01, %v190_v17  ;;  %v193_v26 = vld [vmem:[%s815_s24 + $0x1b0] sm:$0xff]  ;;  %v379_v27 = vsel %vm251_vm0, %v187_v8, %v315_v16  ;;  %vm254_vm3 = vcmp.ge.f32.partialorder %v190_v17, 0.0 }
  0x53   : > { %433 = vst [vmem:[%s830_s17 + $0x130] sm:$0xff] %v369_v61  ;;  %v319_v28 = vmul.f32 0.01, %v191_v20  ;;  %v194_v29 = vld [vmem:[%s815_s24 + $0x1b8] sm:$0xff]  ;;  %v380_v30 = vsel %vm252_vm1, %v188_v11, %v316_v19  ;;  %vm255_vm4 = vcmp.ge.f32.partialorder %v191_v20, 0.0  ;;  %v195_v32 = vld [vmem:[%s815_s24 + $0x1c0] sm:$0xff]  ;;  %v381_v33 = vsel %vm253_vm2, %v189_v14, %v317_v22 }
  0x54   : > { %434 = vst [vmem:[%s830_s17 + $0x138] sm:$0xff] %v370_v0  ;;  %v320_v31 = vmul.f32 0.01, %v192_v23  ;;  %vm256_vm5 = vcmp.ge.f32.partialorder %v192_v23, 0.0  ;;  %v321_v34 = vmul.f32 0.01, %v193_v26  ;;  %v382_v36 = vsel %vm254_vm3, %v190_v17, %v318_v25 }
  0x55   : > { %435 = vst [vmem:[%s830_s17 + $0x140] sm:$0xff] %v371_v3  ;;  %v196_v35 = vld [vmem:[%s815_s24 + $0x1c8] sm:$0xff]  ;;  %vm257_vm6 = vcmp.ge.f32.partialorder %v193_v26, 0.0  ;;  %v322_v37 = vmul.f32 0.01, %v194_v29  ;;  %v197_v38 = vld [vmem:[%s815_s24 + $0x1d0] sm:$0xff]  ;;  %v383_v39 = vsel %vm255_vm4, %v191_v20, %v319_v28 }
  0x56   : > { %436 = vst [vmem:[%s830_s17 + $0x148] sm:$0xff] %v372_v6  ;;  %vm258_vm7 = vcmp.ge.f32.partialorder %v194_v29, 0.0  ;;  %v323_v40 = vmul.f32 0.01, %v195_v32  ;;  %v198_v41 = vld [vmem:[%s815_s24 + $0x1d8] sm:$0xff]  ;;  %v384_v42 = vsel %vm256_vm5, %v192_v23, %v320_v31  ;;  %vm259_vm8 = vcmp.ge.f32.partialorder %v195_v32, 0.0 }
  0x57   : > { %437 = vst [vmem:[%s830_s17 + $0x150] sm:$0xff] %v373_v9  ;;  %v324_v43 = vmul.f32 0.01, %v196_v35  ;;  %v199_v44 = vld [vmem:[%s815_s24 + $0x1e0] sm:$0xff]  ;;  %v385_v45 = vsel %vm257_vm6, %v193_v26, %v321_v34  ;;  %vm260_vm9 = vcmp.ge.f32.partialorder %v196_v35, 0.0  ;;  %v200_v47 = vld [vmem:[%s815_s24 + $0x1e8] sm:$0xff]  ;;  %v386_v48 = vsel %vm258_vm7, %v194_v29, %v322_v37 }
  0x58   : > { %438 = vst [vmem:[%s830_s17 + $0x158] sm:$0xff] %v374_v12  ;;  %v325_v46 = vmul.f32 0.01, %v197_v38  ;;  %vm261_vm10 = vcmp.ge.f32.partialorder %v197_v38, 0.0  ;;  %v326_v49 = vmul.f32 0.01, %v198_v41  ;;  %v387_v51 = vsel %vm259_vm8, %v195_v32, %v323_v40 }
  0x59   : > { %439 = vst [vmem:[%s830_s17 + $0x160] sm:$0xff] %v375_v15  ;;  %v201_v50 = vld [vmem:[%s815_s24 + $0x1f0] sm:$0xff]  ;;  %vm262_vm11 = vcmp.ge.f32.partialorder %v198_v41, 0.0  ;;  %v327_v52 = vmul.f32 0.01, %v199_v44  ;;  %v202_v53 = vld [vmem:[%s815_s24 + $0x1f8] sm:$0xff]  ;;  %v388_v54 = vsel %vm260_vm9, %v196_v35, %v324_v43 }
  0x5a   : > { %440 = vst [vmem:[%s830_s17 + $0x168] sm:$0xff] %v376_v18  ;;  %vm263_vm12 = vcmp.ge.f32.partialorder %v199_v44, 0.0  ;;  %v328_v55 = vmul.f32 0.01, %v200_v47  ;;  %v389_v56 = vsel %vm261_vm10, %v197_v38, %v325_v46  ;;  %vm264_vm13 = vcmp.ge.f32.partialorder %v200_v47, 0.0  ;;  %s472_s28 = sshll.u32 %s830_s17, 4  ;;  %s473_s28 = int_to_ptr.vmem [resolvable:$true] %s472_s28 }
  0x5b   : > { %441 = vst [vmem:[%s830_s17 + $0x170] sm:$0xff] %v377_v21  ;;  %v329_v57 = vmul.f32 0.01, %v201_v50  ;;  %v390_v58 = vsel %vm262_vm11, %v198_v41, %v326_v49  ;;  %vm265_vm14 = vcmp.ge.f32.partialorder %v201_v50, 0.0  ;;  %v330_v59 = vmul.f32 0.01, %v202_v53 }
  0x5c   : > { %442 = vst [vmem:[%s830_s17 + $0x178] sm:$0xff] %v378_v24  ;;  %v391_v60 = vsel %vm263_vm12, %v199_v44, %v327_v52  ;;  %vm266_vm15 = vcmp.ge.f32.partialorder %v202_v53, 0.0  ;;  %v392_v61 = vsel %vm264_vm13, %v200_v47, %v328_v55  ;;  %s474_s29 = sshll.u32 %s471_s27, 4  ;;  %s460_s30 = scalar_lea.sflag [#allocation4], %s811_s21  ;;  %s475_s29 = int_to_ptr.hbm [resolvable:$true] %s474_s29 }
  0x5d   : > { %443 = vst [vmem:[%s830_s17 + $0x180] sm:$0xff] %v379_v27  ;;  %v393_v62 = vsel %vm265_vm14, %v201_v50, %v329_v57  ;;  %v394_v63 = vsel %vm266_vm15, %v202_v53, %v330_v59  ;;  %s658_s2 = sshra.s32 %s475_s29, 4  ;;  %s664_s11 = scalar_lea.hbm %s985_s1, 2048  ;;  %s659_s2 = int_to_ptr.hbm [resolvable:$true] %s658_s2 }
  0x5e   : > { %444 = vst [vmem:[%s830_s17 + $0x188] sm:$0xff] %v380_v30  ;;  %s660_s3 = scalar_lea.hbm %s659_s2, 512  ;;  %p665_p0 = scmp.lt.s32.totalorder %s659_s2, %s985_s1 }
  0x5f   : > { %445 = vst [vmem:[%s830_s17 + $0x190] sm:$0xff] %v381_v33  ;;  %p661_p6 = scmp.ne.s32.totalorder %s659_s2, %s660_s3  ;;  %p666_p2 = scmp.lt.s32.totalorder %s664_s11, %s660_s3 }
  0x60   : > { %446 = vst [vmem:[%s830_s17 + $0x198] sm:$0xff] %v382_v36 }
  0x61   : > { %447 = vst [vmem:[%s830_s17 + $0x1a0] sm:$0xff] %v383_v39  ;;  %p662_p12 = pnand %p661_p6, %p775_p10  ;;  %p667_p3 = por %p666_p2, %p665_p0 }
  0x62   : > { %448 = vst [vmem:[%s830_s17 + $0x1a8] sm:$0xff] %v384_v42 }
  0x63   : > { %449 = vst [vmem:[%s830_s17 + $0x1b0] sm:$0xff] %v385_v45  ;;  %p663_p13 = pneg %p662_p12 }
  0x64   : > { %450 = vst [vmem:[%s830_s17 + $0x1b8] sm:$0xff] %v386_v48 }
  0x65   : > { %451 = vst [vmem:[%s830_s17 + $0x1c0] sm:$0xff] %v387_v51  ;;  %p668_p4 = pnand %p667_p3, %p663_p13 }
  0x66   : > { %452 = vst [vmem:[%s830_s17 + $0x1c8] sm:$0xff] %v388_v54 }
  0x67   : > { %453 = vst [vmem:[%s830_s17 + $0x1d0] sm:$0xff] %v389_v56 }
  0x68   : > { %454 = vst [vmem:[%s830_s17 + $0x1d8] sm:$0xff] %v390_v58 }
  0x69   : > { %455 = vst [vmem:[%s830_s17 + $0x1e0] sm:$0xff] %v391_v60 }
  0x6a   : > { %456 = vst [vmem:[%s830_s17 + $0x1e8] sm:$0xff] %v392_v61 }
  0x6b   : > { %457 = vst [vmem:[%s830_s17 + $0x1f0] sm:$0xff] %v393_v62 }
  0x6c   : > { %458 = vst [vmem:[%s830_s17 + $0x1f8] sm:$0xff] %v394_v63 }
  0x6d   : > { %671 = shalt.err (!%p668_p4)
}
  0x6e   : > { %s714_s16 = smov 128   ;;  %s715_s20 = smov 8  }
  0x6f   : > { %566 = dma.vmem_to_hbm [thread:$0]  (%p775_p10), %s473_s28, 8192, %s475_s29, %s460_s30, %s714_s16, %s714_s16, %s715_s20  }
  0x70 PF: > { %p577_p5 = scmp.ge.s32.totalorder %s710_s9, 2  ;;  %s489_s21 = sand.u32 1, %s698_s6  }
  0x71   : > { %s490_s22 = scalar_lea.sflag [#allocation4], %s489_s21 }
  0x72   : > { %p573_p7 = pnand %p577_p5, %p779_p11 }
  0x74   : > { %p574_p8 = pneg %p573_p7 }
  0x76   : > { %693 = dma.done.wait (%p574_p8), %s490_s22, 8192  }
  0x77   : > { %695 = vsyncadd (%p574_p8), %s490_s22, 4294959104  ;;  %p14_p9 = scmp.ge.s32.totalorder %s751_s12, 6   ;;  %s991_s6 = smov %s702_s7 }
  0x78   : > { %s992_s7 = smov %s706_s8  ;;  %s993_s8 = smov %s763_s15 }
  0x79   : > { %s994_s9 = smov %s751_s12  ;;  %16 = sbr.rel (!%p14_p9) target bundleno = 5 (0x5), region = 69 }
  0x7e   :  { %496 = vsyncpa [#allocation3], 1 }
  0x7f   :  { %498 = vsyncpa [#allocation3 + $0x1], 1 }
  0x80   :  { %499 = vsyncpa [#allocation4], 1 }
  0x81   :  { %501 = vsyncpa [#allocation4 + $0x1], 1 }

</bundles_post_ra>
